<compile_context>
chip_gen: v7x
topology: tpu7x:2x2x1
jax: 0.10.0
libtpu: 0.0.40
codegen_flags: <defaults>
</compile_context>

<pallas_src>
import jax
import jax.numpy as jnp
from jax.experimental import pallas as pl
from jax.experimental.pallas import tpu as pltpu

HIDDEN = 200
IN_DIM = 784
OUT_DIM = 10
MAX_TILE_B = 1024   # x f32: 2 bufs x 1024 x 784 x 4B ~= 6.3 MB -> fits everywhere


def _round_up(n, m):
    return ((n + m - 1) // m) * m


def classifier_kernel(x_ref, w1_ref, b1_ref, g_ref, beta_ref, w2_ref, b2_ref,
                      o_ref):
    # x tile arrives in its native dtype; cast to bf16 in-kernel for the MXU.
    x = x_ref[...].astype(jnp.bfloat16)

    # Linear(784, 200) on the MXU with f32 accumulation.
    h = jnp.dot(x, w1_ref[...], preferred_element_type=jnp.float32)
    h = h + b1_ref[...]                                     # (TILE_B, 200) f32

    # LeakyReLU(negative_slope=0.02)
    h = jnp.where(h > 0, h, 0.02 * h)

    # LayerNorm(200): one-pass stats (biased variance, eps=1e-5).
    inv_n = 1.0 / float(HIDDEN)
    s = jnp.sum(h, axis=-1, keepdims=True)
    s2 = jnp.sum(h * h, axis=-1, keepdims=True)
    mean = s * inv_n
    var = s2 * inv_n - mean * mean
    h = (h - mean) * jax.lax.rsqrt(var + 1e-5)
    h = h * g_ref[...] + beta_ref[...]                      # (TILE_B, 200) f32

    # Linear(200, 10) on the MXU (bf16 operands, f32 accumulation).
    logits = jnp.dot(h.astype(jnp.bfloat16), w2_ref[...],
                     preferred_element_type=jnp.float32)
    logits = logits + b2_ref[...]                           # (TILE_B, 10) f32

    # Sigmoid: exp + approximate reciprocal -> both land on the EUP slot.
    denom = 1.0 + jnp.exp(-logits)
    o_ref[...] = pl.reciprocal(denom, approx=True).astype(o_ref.dtype)


def prepare_params(params):
    """One-time parameter prep (hoisted out of the per-call path)."""
    w1, b1, gamma, beta, w2, b2 = params
    return (w1.astype(jnp.bfloat16),          # (784, 200) bf16, VMEM-resident
            b1.astype(jnp.float32),           # (1, 200)
            gamma.astype(jnp.float32),        # (1, 200)
            beta.astype(jnp.float32),         # (1, 200)
            w2.astype(jnp.bfloat16),          # (200, 10) bf16
            b2.astype(jnp.float32))           # (1, 10)


def _pick_tile_b(batch, tile_b):
    if tile_b is not None:
        return max(8, _round_up(min(tile_b, batch), 8))
    # Aim for >= 4 grid steps (pipelining + v7x megacore sharding), >= 8 rows
    # per tile (sublane alignment), capped so VMEM stays comfortable.
    return min(MAX_TILE_B, max(8, _round_up(pl.cdiv(batch, 4), 8)))


def classifier_forward(x, prepared_params, tile_b=None, x_buffers=None):
    """x: (B, 784) float32 (native dtype; no wrapper cast/pad).

    prepared_params: output of prepare_params().
    x_buffers: optional int (e.g. 3) -> pl.Buffered multi-buffering on the x
               stream; leave None for the default double-buffered pipeline.
    """
    w1, b1, gamma, beta, w2, b2 = prepared_params
    B, D = x.shape
    assert D == IN_DIM

    tb = _pick_tile_b(B, tile_b)
    grid = (pl.cdiv(B, tb),)   # partial last tile handled by block machinery

    x_spec_kwargs = {}
    if x_buffers is not None:
        x_spec_kwargs["pipeline_mode"] = pl.Buffered(x_buffers)  # v7x tuning

    out = pl.pallas_call(
        classifier_kernel,
        out_shape=jax.ShapeDtypeStruct((B, OUT_DIM), jnp.float32),
        grid=grid,
        in_specs=[
            pl.BlockSpec((tb, IN_DIM), lambda i: (i, 0),
                         **x_spec_kwargs),                       # x (streamed)
            pl.BlockSpec((IN_DIM, HIDDEN), lambda i: (0, 0)),    # w1 (resident)
            pl.BlockSpec((1, HIDDEN), lambda i: (0, 0)),         # b1
            pl.BlockSpec((1, HIDDEN), lambda i: (0, 0)),         # gamma
            pl.BlockSpec((1, HIDDEN), lambda i: (0, 0)),         # beta
            pl.BlockSpec((HIDDEN, OUT_DIM), lambda i: (0, 0)),   # w2
            pl.BlockSpec((1, OUT_DIM), lambda i: (0, 0)),        # b2
        ],
        out_specs=pl.BlockSpec((tb, OUT_DIM), lambda i: (i, 0)),
        compiler_params=pltpu.CompilerParams(
            dimension_semantics=("parallel",)),
    )(x, w1, b1, gamma, beta, w2, b2)

    return out


def init_params(key):
    k1, k2, k3, k4 = jax.random.split(key, 4)
    # PyTorch nn.Linear init: U(-1/sqrt(fan_in), 1/sqrt(fan_in))
    lim1 = 1.0 / jnp.sqrt(float(IN_DIM))
    w1 = jax.random.uniform(k1, (IN_DIM, HIDDEN), jnp.float32, -lim1, lim1)
    b1 = jax.random.uniform(k2, (1, HIDDEN), jnp.float32, -lim1, lim1)
    # LayerNorm elementwise affine defaults: weight=1, bias=0
    gamma = jnp.ones((1, HIDDEN), jnp.float32)
    beta = jnp.zeros((1, HIDDEN), jnp.float32)
    lim2 = 1.0 / jnp.sqrt(float(HIDDEN))
    w2 = jax.random.uniform(k3, (HIDDEN, OUT_DIM), jnp.float32, -lim2, lim2)
    b2 = jax.random.uniform(k4, (1, OUT_DIM), jnp.float32, -lim2, lim2)
    return (w1, b1, gamma, beta, w2, b2)


def reference_forward(x, params):
    """Pure-JAX f32 reference matching the PyTorch module."""
    w1, b1, gamma, beta, w2, b2 = params
    h = x @ w1 + b1
    h = jnp.where(h > 0, h, 0.02 * h)
    mean = jnp.mean(h, axis=-1, keepdims=True)
    var = jnp.mean((h - mean) ** 2, axis=-1, keepdims=True)
    h = (h - mean) * jax.lax.rsqrt(var + 1e-5) * gamma + beta
    logits = h @ w2 + b2
    return 1.0 / (1.0 + jnp.exp(-logits))


if __name__ == "__main__":
    key = jax.random.PRNGKey(0)
    pkey, xkey = jax.random.split(key)
    params = init_params(pkey)
    prepared = prepare_params(params)   # one-time prep, outside the call path

    B = 8  # small batch (MNIST-like, flattened 28x28)
    x = jax.random.uniform(xkey, (B, IN_DIM), jnp.float32)

    out = jax.block_until_ready(classifier_forward(x, prepared))
    ref = reference_forward(x, params)

    assert out.shape == (B, OUT_DIM)
    assert out.dtype == jnp.float32
    max_err = float(jnp.max(jnp.abs(out - ref)))
    assert max_err < 2e-2, f"max abs error vs f32 reference: {max_err}"

    print("KERNEL_OK")
</pallas_src>

<mosaic_0001>
module attributes {stable_mosaic.version = 11 : i64} {
  func.func @classifier_kernel(%arg0: i32, %arg1: memref<8x784xf32, #tpu.memory_space<vmem>>, %arg2: memref<784x200xbf16, #tpu.memory_space<vmem>>, %arg3: memref<1x200xf32, #tpu.memory_space<vmem>>, %arg4: memref<1x200xf32, #tpu.memory_space<vmem>>, %arg5: memref<1x200xf32, #tpu.memory_space<vmem>>, %arg6: memref<200x10xbf16, #tpu.memory_space<vmem>>, %arg7: memref<1x10xf32, #tpu.memory_space<vmem>>, %arg8: memref<8x10xf32, #tpu.memory_space<vmem>>) attributes {dimension_semantics = [#tpu.dimension_semantics<parallel>], iteration_bounds = array<i64: 1>, scalar_prefetch = 0 : i64, scratch_operands = 0 : i64, tpu.core_type = #tpu.core_type<tc>, window_params = [{transform_indices = @transform_0, window_bounds = array<i64: 8, 784>}, {pipeline_mode = #tpu.pipeline_mode<synchronous>, transform_indices = @transform_1, window_bounds = array<i64: 784, 200>}, {pipeline_mode = #tpu.pipeline_mode<synchronous>, transform_indices = @transform_2, window_bounds = array<i64: 1, 200>}, {pipeline_mode = #tpu.pipeline_mode<synchronous>, transform_indices = @transform_3, window_bounds = array<i64: 1, 200>}, {pipeline_mode = #tpu.pipeline_mode<synchronous>, transform_indices = @transform_4, window_bounds = array<i64: 1, 200>}, {pipeline_mode = #tpu.pipeline_mode<synchronous>, transform_indices = @transform_5, window_bounds = array<i64: 200, 10>}, {pipeline_mode = #tpu.pipeline_mode<synchronous>, transform_indices = @transform_6, window_bounds = array<i64: 1, 10>}, {transform_indices = @transform_7, window_bounds = array<i64: 8, 10>}]} {
    %c0 = arith.constant 0 : index
    %c0_0 = arith.constant 0 : index
    %0 = vector.load %arg1[%c0, %c0_0] : memref<8x784xf32, #tpu.memory_space<vmem>>, vector<8x784xf32>
    %1 = arith.truncf %0 : vector<8x784xf32> to vector<8x784xbf16>
    %c0_1 = arith.constant 0 : index
    %c0_2 = arith.constant 0 : index
    %2 = vector.load %arg2[%c0_1, %c0_2] : memref<784x200xbf16, #tpu.memory_space<vmem>>, vector<784x200xbf16>
    %cst = arith.constant dense<0.000000e+00> : vector<8x200xf32>
    %3 = tpu.matmul %1, %2, %cst {dimension_numbers = #tpu.dot_dimension_numbers<[1], [0], [0], [1], [0, 0, 1, 1], [], []>} : vector<8x784xbf16>, vector<784x200xbf16>, vector<8x200xf32> -> vector<8x200xf32>
    %c0_3 = arith.constant 0 : index
    %c0_4 = arith.constant 0 : index
    %4 = vector.load %arg3[%c0_3, %c0_4] : memref<1x200xf32, #tpu.memory_space<vmem>>, vector<1x200xf32>
    %5 = vector.broadcast %4 : vector<1x200xf32> to vector<8x200xf32>
    %6 = arith.addf %3, %5 : vector<8x200xf32>
    %cst_5 = arith.constant 0.000000e+00 : f32
    %7 = vector.broadcast %cst_5 : f32 to vector<8x200xf32>
    %8 = arith.cmpf ogt, %6, %7 : vector<8x200xf32>
    %cst_6 = arith.constant 2.000000e-02 : f32
    %9 = vector.broadcast %cst_6 : f32 to vector<8x200xf32>
    %10 = arith.mulf %9, %6 : vector<8x200xf32>
    %11 = arith.select %8, %6, %10 : vector<8x200xi1>, vector<8x200xf32>
    %cst_7 = arith.constant dense<0.000000e+00> : vector<8xf32>
    %12 = vector.multi_reduction <add>, %11, %cst_7 [1] : vector<8x200xf32> to vector<8xf32>
    %13 = vector.shape_cast %12 : vector<8xf32> to vector<8x1xf32>
    %14 = arith.mulf %11, %11 : vector<8x200xf32>
    %cst_8 = arith.constant dense<0.000000e+00> : vector<8xf32>
    %15 = vector.multi_reduction <add>, %14, %cst_8 [1] : vector<8x200xf32> to vector<8xf32>
    %16 = vector.shape_cast %15 : vector<8xf32> to vector<8x1xf32>
    %cst_9 = arith.constant 5.000000e-03 : f32
    %17 = vector.broadcast %cst_9 : f32 to vector<8x1xf32>
    %18 = arith.mulf %13, %17 : vector<8x1xf32>
    %cst_10 = arith.constant 5.000000e-03 : f32
    %19 = vector.broadcast %cst_10 : f32 to vector<8x1xf32>
    %20 = arith.mulf %16, %19 : vector<8x1xf32>
    %21 = arith.mulf %18, %18 : vector<8x1xf32>
    %22 = arith.subf %20, %21 : vector<8x1xf32>
    %23 = vector.broadcast %18 : vector<8x1xf32> to vector<8x200xf32>
    %24 = arith.subf %11, %23 : vector<8x200xf32>
    %cst_11 = arith.constant 9.99999974E-6 : f32
    %25 = vector.broadcast %cst_11 : f32 to vector<8x1xf32>
    %26 = arith.addf %22, %25 : vector<8x1xf32>
    %27 = math.rsqrt %26 : vector<8x1xf32>
    %28 = vector.broadcast %27 : vector<8x1xf32> to vector<8x200xf32>
    %29 = arith.mulf %24, %28 : vector<8x200xf32>
    %c0_12 = arith.constant 0 : index
    %c0_13 = arith.constant 0 : index
    %30 = vector.load %arg4[%c0_12, %c0_13] : memref<1x200xf32, #tpu.memory_space<vmem>>, vector<1x200xf32>
    %31 = vector.broadcast %30 : vector<1x200xf32> to vector<8x200xf32>
    %32 = arith.mulf %29, %31 : vector<8x200xf32>
    %c0_14 = arith.constant 0 : index
    %c0_15 = arith.constant 0 : index
    %33 = vector.load %arg5[%c0_14, %c0_15] : memref<1x200xf32, #tpu.memory_space<vmem>>, vector<1x200xf32>
    %34 = vector.broadcast %33 : vector<1x200xf32> to vector<8x200xf32>
    %35 = arith.addf %32, %34 : vector<8x200xf32>
    %36 = arith.truncf %35 : vector<8x200xf32> to vector<8x200xbf16>
    %c0_16 = arith.constant 0 : index
    %c0_17 = arith.constant 0 : index
    %37 = vector.load %arg6[%c0_16, %c0_17] : memref<200x10xbf16, #tpu.memory_space<vmem>>, vector<200x10xbf16>
    %cst_18 = arith.constant dense<0.000000e+00> : vector<8x10xf32>
    %38 = tpu.matmul %36, %37, %cst_18 {dimension_numbers = #tpu.dot_dimension_numbers<[1], [0], [0], [1], [0, 0, 1, 1], [], []>} : vector<8x200xbf16>, vector<200x10xbf16>, vector<8x10xf32> -> vector<8x10xf32>
    %c0_19 = arith.constant 0 : index
    %c0_20 = arith.constant 0 : index
    %39 = vector.load %arg7[%c0_19, %c0_20] : memref<1x10xf32, #tpu.memory_space<vmem>>, vector<1x10xf32>
    %40 = vector.broadcast %39 : vector<1x10xf32> to vector<8x10xf32>
    %41 = arith.addf %38, %40 : vector<8x10xf32>
    %cst_21 = arith.constant 0.000000e+00 : f32
    %42 = vector.broadcast %cst_21 : f32 to vector<8x10xf32>
    %43 = arith.subf %42, %41 : vector<8x10xf32>
    %44 = math.exp %43 : vector<8x10xf32>
    %cst_22 = arith.constant 1.000000e+00 : f32
    %45 = vector.broadcast %cst_22 : f32 to vector<8x10xf32>
    %46 = arith.addf %45, %44 : vector<8x10xf32>
    %47 = tpu.reciprocal %46 {approx = true} : vector<8x10xf32> -> vector<8x10xf32>
    %c0_23 = arith.constant 0 : index
    %c0_24 = arith.constant 0 : index
    %48 = vector.load %arg8[%c0_23, %c0_24] : memref<8x10xf32, #tpu.memory_space<vmem>>, vector<8x10xf32>
    tpu.vector_store %arg8[%c0_23, %c0_24], %47 {strides = array<i32>} : memref<8x10xf32, #tpu.memory_space<vmem>>, vector<8x10xf32>,
    return
  }
  func.func @transform_0(%arg0: i32) -> (i32, i32) {
    %c0_i32 = arith.constant 0 : i32
    %c0_i32_0 = arith.constant 0 : i32
    return %arg0, %c0_i32 : i32, i32
  }
  func.func @transform_1(%arg0: i32) -> (i32, i32) {
    %c0_i32 = arith.constant 0 : i32
    %c0_i32_0 = arith.constant 0 : i32
    %c0_i32_1 = arith.constant 0 : i32
    return %c0_i32, %c0_i32_0 : i32, i32
  }
  func.func @transform_2(%arg0: i32) -> (i32, i32) {
    %c0_i32 = arith.constant 0 : i32
    %c0_i32_0 = arith.constant 0 : i32
    %c0_i32_1 = arith.constant 0 : i32
    return %c0_i32, %c0_i32_0 : i32, i32
  }
  func.func @transform_3(%arg0: i32) -> (i32, i32) {
    %c0_i32 = arith.constant 0 : i32
    %c0_i32_0 = arith.constant 0 : i32
    %c0_i32_1 = arith.constant 0 : i32
    return %c0_i32, %c0_i32_0 : i32, i32
  }
  func.func @transform_4(%arg0: i32) -> (i32, i32) {
    %c0_i32 = arith.constant 0 : i32
    %c0_i32_0 = arith.constant 0 : i32
    %c0_i32_1 = arith.constant 0 : i32
    return %c0_i32, %c0_i32_0 : i32, i32
  }
  func.func @transform_5(%arg0: i32) -> (i32, i32) {
    %c0_i32 = arith.constant 0 : i32
    %c0_i32_0 = arith.constant 0 : i32
    %c0_i32_1 = arith.constant 0 : i32
    return %c0_i32, %c0_i32_0 : i32, i32
  }
  func.func @transform_6(%arg0: i32) -> (i32, i32) {
    %c0_i32 = arith.constant 0 : i32
    %c0_i32_0 = arith.constant 0 : i32
    %c0_i32_1 = arith.constant 0 : i32
    return %c0_i32, %c0_i32_0 : i32, i32
  }
  func.func @transform_7(%arg0: i32) -> (i32, i32) {
    %c0_i32 = arith.constant 0 : i32
    %c0_i32_0 = arith.constant 0 : i32
    return %arg0, %c0_i32 : i32, i32
  }
}

</mosaic_0001>

<bundles_post_ra>
// kernel: tpu_custom_call.1
= control target key start
LH: loop header
LB: loop body
LE: loop exit
PB: predicated region body
PF: predicated region fallthrough
CT: control target
= control target key end

     0   :  { %s1805_s0 = inlined_call_operand.vmem [shape: f32[8,784], index: 0, kind: input, shape index: {}]   ;;  %s1806_s1 = inlined_call_operand.vmem [shape: bf16[784,200], index: 1, kind: input, shape index: {}]   ;;  %s1807_s2 = inlined_call_operand.vmem [shape: f32[1,200], index: 2, kind: input, shape index: {}]   ;;  %s1808_s3 = inlined_call_operand.vmem [shape: f32[1,200], index: 3, kind: input, shape index: {}]   ;;  %s1809_s4 = inlined_call_operand.vmem [shape: f32[1,200], index: 4, kind: input, shape index: {}]   ;;  %s1810_s5 = inlined_call_operand.vmem [shape: bf16[200,10], index: 5, kind: input, shape index: {}]   ;;  %s1811_s6 = inlined_call_operand.vmem [shape: f32[1,10], index: 6, kind: input, shape index: {}]   ;;  %s1812_s7 = inlined_call_operand.hbm [shape: f32[8,10], index: 7, kind: output, shape index: {}]  }
   0x1   :  { %v1168_v0 = vld [vmem:[%s1806_s1 + $0x104] ss:$8 sps:$4 sm:$0xff]   ;;  %v1170_v1 = vld [vmem:[%s1806_s1 + $0x100] ss:$8 sps:$4 sm:$0xff]   ;;  %v1171_v2 = vld [vmem:[%s1806_s1 + $0x114] ss:$8 sps:$4 sm:$0xff]  }
   0x2   :  { %687 = vmatprep.subr.bf16.mxu0 %v1168_v0  ;;  %v1173_v3 = vld [vmem:[%s1806_s1 + $0x110] ss:$8 sps:$4 sm:$0xff]   ;;  %v1174_v4 = vld [vmem:[%s1806_s1 + $0x124] ss:$8 sps:$4 sm:$0xff]   ;;  %v1176_v5 = vld [vmem:[%s1806_s1 + $0x120] ss:$8 sps:$4 sm:$0xff]  }
   0x3   :  { %688 = vmatpush1.bf16.msra.mxu0 %v1170_v1  ;;  %v1177_v6 = vld [vmem:[%s1806_s1 + $0x134] ss:$8 sps:$4 sm:$0xff]   ;;  %v1179_v7 = vld [vmem:[%s1806_s1 + $0x130] ss:$8 sps:$4 sm:$0xff]   ;;  %v1180_v8 = vld [vmem:[%s1806_s1 + $0x144] ss:$8 sps:$4 sm:$0xff]  }
   0x4   :  { %689 = vmatprep.subr.bf16.mxu0 %v1171_v2  ;;  %v1182_v9 = vld [vmem:[%s1806_s1 + $0x140] ss:$8 sps:$4 sm:$0xff]   ;;  %v1183_v10 = vld [vmem:[%s1806_s1 + $0x154] ss:$8 sps:$4 sm:$0xff]   ;;  %v1185_v11 = vld [vmem:[%s1806_s1 + $0x150] ss:$8 sps:$4 sm:$0xff]  }
   0x5   :  { %v1210_v12 = vld [vmem:[%s1806_s1 + $0x4] ss:$8 sps:$4 sm:$0xff]   ;;  %v1212_v13 = vld [vmem:[%s1806_s1] ss:$8 sps:$4 sm:$0xff]   ;;  %v1216_v15 = vld [vmem:[%s1806_s1 + $0x14] ss:$8 sps:$4 sm:$0xff]  }
   0x6   :  { %v1186_v14 = vld [vmem:[%s1806_s1 + $0x164] ss:$8 sps:$4 sm:$0xff]   ;;  %646 = vmatprep.subr.bf16.mxu1 %v1210_v12  ;;  %v1218_v16 = vld [vmem:[%s1806_s1 + $0x10] ss:$8 sps:$4 sm:$0xff]   ;;  %v1188_v17 = vld [vmem:[%s1806_s1 + $0x160] ss:$8 sps:$4 sm:$0xff]  }
   0x7   :  { %690 = vmatpush1.bf16.msra.mxu0 %v1173_v3  ;;  %647 = vmatpush1.bf16.msra.mxu1 %v1212_v13  ;;  %v1189_v18 = vld [vmem:[%s1806_s1 + $0x174] ss:$8 sps:$4 sm:$0xff]   ;;  %v1222_v19 = vld [vmem:[%s1806_s1 + $0x24] ss:$8 sps:$4 sm:$0xff]   ;;  %v1224_v21 = vld [vmem:[%s1806_s1 + $0x20] ss:$8 sps:$4 sm:$0xff]  }
   0x8   :  { %691 = vmatprep.subr.bf16.mxu0 %v1174_v4  ;;  %648 = vmatprep.subr.bf16.mxu1 %v1216_v15  ;;  %v31_v20 = vld [vmem:[%s1805_s0 + $0x18] sm:$0xff]  ;;  %v1192_v24 = vld [vmem:[%s1806_s1 + $0x184] ss:$8 sps:$4 sm:$0xff]   ;;  %v1194_v26 = vld [vmem:[%s1806_s1 + $0x180] ss:$8 sps:$4 sm:$0xff]  }
   0x9   :  { %v38_v22 = vpack.c.bf16 %v31_v20, %v31_v20  ;;  %v1191_v23 = vld [vmem:[%s1806_s1 + $0x170] ss:$8 sps:$4 sm:$0xff]   ;;  %v1228_v25 = vld [vmem:[%s1806_s1 + $0x34] ss:$8 sps:$4 sm:$0xff]   ;;  %v1234_v28 = vld [vmem:[%s1806_s1 + $0x44] ss:$8 sps:$4 sm:$0xff]  }
   0xa   :  { %v1230_v27 = vld [vmem:[%s1806_s1 + $0x30] ss:$8 sps:$4 sm:$0xff]   ;;  %v1195_v29 = vld [vmem:[%s1806_s1 + $0x194] ss:$8 sps:$4 sm:$0xff]   ;;  %v1236_v31 = vld [vmem:[%s1806_s1 + $0x40] ss:$8 sps:$4 sm:$0xff]  }
   0xb   :  { %692 = vmatpush1.bf16.msra.mxu0 %v1176_v5  ;;  %649 = vmatpush1.bf16.msra.mxu1 %v1218_v16  ;;  %v1197_v30 = vld [vmem:[%s1806_s1 + $0x190] ss:$8 sps:$4 sm:$0xff]   ;;  %v1240_v32 = vld [vmem:[%s1806_s1 + $0x54] ss:$8 sps:$4 sm:$0xff]   ;;  %v1198_v33 = vld [vmem:[%s1806_s1 + $0x1a4] ss:$8 sps:$4 sm:$0xff]  }
   0xc   :  { %693 = vmatprep.subr.bf16.mxu0 %v1177_v6  ;;  %650 = vmatprep.subr.bf16.mxu1 %v1222_v19  ;;  %v1200_v34 = vld [vmem:[%s1806_s1 + $0x1a0] ss:$8 sps:$4 sm:$0xff]   ;;  %v1242_v35 = vld [vmem:[%s1806_s1 + $0x50] ss:$8 sps:$4 sm:$0xff]   ;;  %v1246_v36 = vld [vmem:[%s1806_s1 + $0x64] ss:$8 sps:$4 sm:$0xff]  }
   0xd   :  { %719 = vmatprep.mubr.bf16.mxu0 %v38_v22  ;;  %v1201_v37 = vld [vmem:[%s1806_s1 + $0x1b4] ss:$8 sps:$4 sm:$0xff]   ;;  %v1203_v38 = vld [vmem:[%s1806_s1 + $0x1b0] ss:$8 sps:$4 sm:$0xff]   ;;  %v1248_v39 = vld [vmem:[%s1806_s1 + $0x60] ss:$8 sps:$4 sm:$0xff]  }
   0xe   :  { %v1252_v40 = vld [vmem:[%s1806_s1 + $0x74] ss:$8 sps:$4 sm:$0xff]   ;;  %v1204_v41 = vld [vmem:[%s1806_s1 + $0x1c4] ss:$8 sps:$4 sm:$0xff]   ;;  %v1206_v42 = vld [vmem:[%s1806_s1 + $0x1c0] ss:$8 sps:$4 sm:$0xff]  }
   0xf   :  { %694 = vmatpush1.bf16.msra.mxu0 %v1179_v7  ;;  %651 = vmatpush1.bf16.msra.mxu1 %v1224_v21  ;;  %v1254_v43 = vld [vmem:[%s1806_s1 + $0x70] ss:$8 sps:$4 sm:$0xff]   ;;  %v1258_v44 = vld [vmem:[%s1806_s1 + $0x84] ss:$8 sps:$4 sm:$0xff]   ;;  %v1207_v45 = vld [vmem:[%s1806_s1 + $0x1d4] ss:$8 sps:$4 sm:$0xff]  }
  0x10   :  { %695 = vmatprep.subr.bf16.mxu0 %v1180_v8  ;;  %652 = vmatprep.subr.bf16.mxu1 %v1228_v25  ;;  %v1209_v46 = vld [vmem:[%s1806_s1 + $0x1d0] ss:$8 sps:$4 sm:$0xff]   ;;  %v1260_v47 = vld [vmem:[%s1806_s1 + $0x80] ss:$8 sps:$4 sm:$0xff]   ;;  %v1264_v48 = vld [vmem:[%s1806_s1 + $0x94] ss:$8 sps:$4 sm:$0xff]  }
  0x11   :  { %v1213_v49 = vld [vmem:[%s1806_s1 + $0x1e4] ss:$8 sps:$4 sm:$0xff]   ;;  %v1215_v50 = vld [vmem:[%s1806_s1 + $0x1e0] ss:$8 sps:$4 sm:$0xff]   ;;  %v1266_v51 = vld [vmem:[%s1806_s1 + $0x90] ss:$8 sps:$4 sm:$0xff]  }
  0x12   :  { %v1270_v52 = vld [vmem:[%s1806_s1 + $0xa4] ss:$8 sps:$4 sm:$0xff]   ;;  %v1219_v53 = vld [vmem:[%s1806_s1 + $0x1f4] ss:$8 sps:$4 sm:$0xff]   ;;  %v1221_v54 = vld [vmem:[%s1806_s1 + $0x1f0] ss:$8 sps:$4 sm:$0xff]  }
  0x13   :  { %696 = vmatpush1.bf16.msra.mxu0 %v1182_v9  ;;  %653 = vmatpush1.bf16.msra.mxu1 %v1230_v27  ;;  %v30_v55 = vld [vmem:[%s1805_s0 + $0x10] sm:$0xff]  ;;  %v1272_v56 = vld [vmem:[%s1806_s1 + $0xa0] ss:$8 sps:$4 sm:$0xff]   ;;  %v1227_v58 = vld [vmem:[%s1806_s1 + $0x204] ss:$8 sps:$4 sm:$0xff]  }
  0x14   :  { %697 = vmatprep.subr.bf16.mxu0 %v1183_v10  ;;  %654 = vmatprep.subr.bf16.mxu1 %v1234_v28  ;;  %v1276_v57 = vld [vmem:[%s1806_s1 + $0xb4] ss:$8 sps:$4 sm:$0xff]   ;;  %v37_v59 = vpack.c.bf16 %v30_v55, %v30_v55  ;;  %v1278_v60 = vld [vmem:[%s1806_s1 + $0xb0] ss:$8 sps:$4 sm:$0xff]   ;;  %v29_v61 = vld [vmem:[%s1805_s0 + $0x8] sm:$0xff] }
  0x15   :  { %v1225_v62 = vld [vmem:[%s1806_s1 + $0x200] ss:$8 sps:$4 sm:$0xff]   ;;  %v1282_v63 = vld [vmem:[%s1806_s1 + $0xc4] ss:$8 sps:$4 sm:$0xff]   ;;  %v36_v0 = vpack.c.bf16 %v29_v61, %v29_v61  ;;  %v1233_v1 = vld [vmem:[%s1806_s1 + $0x214] ss:$8 sps:$4 sm:$0xff]  }
  0x16   :  { %v1284_v2 = vld [vmem:[%s1806_s1 + $0xc0] ss:$8 sps:$4 sm:$0xff]   ;;  %v1231_v4 = vld [vmem:[%s1806_s1 + $0x210] ss:$8 sps:$4 sm:$0xff]   ;;  %v1239_v5 = vld [vmem:[%s1806_s1 + $0x224] ss:$8 sps:$4 sm:$0xff]  }
  0x17   :  { %698 = vmatpush1.bf16.msra.mxu0 %v1185_v11  ;;  %655 = vmatpush1.bf16.msra.mxu1 %v1236_v31  ;;  %v33_v3 = vld [vmem:[%s1805_s0 + $0x28] sm:$0xff]  ;;  %v1288_v6 = vld [vmem:[%s1806_s1 + $0xd4] ss:$8 sps:$4 sm:$0xff]   ;;  %v1290_v8 = vld [vmem:[%s1806_s1 + $0xd0] ss:$8 sps:$4 sm:$0xff]  }
  0x18   :  { %699 = vmatprep.subr.bf16.mxu0 %v1186_v14  ;;  %656 = vmatprep.subr.bf16.mxu1 %v1240_v32  ;;  %v40_v7 = vpack.c.bf16 %v33_v3, %v33_v3  ;;  %v1237_v9 = vld [vmem:[%s1806_s1 + $0x220] ss:$8 sps:$4 sm:$0xff]   ;;  %v1294_v10 = vld [vmem:[%s1806_s1 + $0xe4] ss:$8 sps:$4 sm:$0xff]   ;;  %v1245_v11 = vld [vmem:[%s1806_s1 + $0x234] ss:$8 sps:$4 sm:$0xff]  }
  0x19   :  { %678 = vmatprep.mubr.bf16.mxu1 %v36_v0  ;;  %v1296_v12 = vld [vmem:[%s1806_s1 + $0xe0] ss:$8 sps:$4 sm:$0xff]   ;;  %v1243_v13 = vld [vmem:[%s1806_s1 + $0x230] ss:$8 sps:$4 sm:$0xff]   ;;  %v1300_v14 = vld [vmem:[%s1806_s1 + $0xf4] ss:$8 sps:$4 sm:$0xff]  }
  0x1a   :  { %v1251_v15 = vld [vmem:[%s1806_s1 + $0x244] ss:$8 sps:$4 sm:$0xff]  }
  0x1b   :  { %700 = vmatpush1.bf16.msra.mxu0 %v1188_v17  ;;  %657 = vmatpush1.bf16.msra.mxu1 %v1242_v35 }
  0x1c   :  { %701 = vmatprep.subr.bf16.mxu0 %v1189_v18  ;;  %658 = vmatprep.subr.bf16.mxu1 %v1246_v36 }
  0x1f   :  { %702 = vmatpush1.bf16.msra.mxu0 %v1191_v23  ;;  %659 = vmatpush1.bf16.msra.mxu1 %v1248_v39 }
  0x20   :  { %703 = vmatprep.subr.bf16.mxu0 %v1192_v24  ;;  %660 = vmatprep.subr.bf16.mxu1 %v1252_v40 }
  0x23   :  { %704 = vmatpush1.bf16.msra.mxu0 %v1194_v26  ;;  %661 = vmatpush1.bf16.msra.mxu1 %v1254_v43 }
  0x24   :  { %705 = vmatprep.subr.bf16.mxu0 %v1195_v29  ;;  %662 = vmatprep.subr.bf16.mxu1 %v1258_v44 }
  0x27   :  { %706 = vmatpush1.bf16.msra.mxu0 %v1197_v30  ;;  %663 = vmatpush1.bf16.msra.mxu1 %v1260_v47 }
  0x28   :  { %707 = vmatprep.subr.bf16.mxu0 %v1198_v33  ;;  %664 = vmatprep.subr.bf16.mxu1 %v1264_v48 }
  0x2b   :  { %708 = vmatpush1.bf16.msra.mxu0 %v1200_v34  ;;  %665 = vmatpush1.bf16.msra.mxu1 %v1266_v51 }
  0x2c   :  { %709 = vmatprep.subr.bf16.mxu0 %v1201_v37  ;;  %666 = vmatprep.subr.bf16.mxu1 %v1270_v52 }
  0x2f   :  { %710 = vmatpush1.bf16.msra.mxu0 %v1203_v38  ;;  %667 = vmatpush1.bf16.msra.mxu1 %v1272_v56 }
  0x30   :  { %711 = vmatprep.subr.bf16.mxu0 %v1204_v41  ;;  %668 = vmatprep.subr.bf16.mxu1 %v1276_v57 }
  0x33   :  { %712 = vmatpush1.bf16.msra.mxu0 %v1206_v42  ;;  %669 = vmatpush1.bf16.msra.mxu1 %v1278_v60 }
  0x34   :  { %713 = vmatprep.subr.bf16.mxu0 %v1207_v45  ;;  %670 = vmatprep.subr.bf16.mxu1 %v1282_v63 }
  0x37   :  { %714 = vmatpush1.bf16.msra.mxu0 %v1209_v46  ;;  %671 = vmatpush1.bf16.msra.mxu1 %v1284_v2 }
  0x38   :  { %715 = vmatprep.subr.bf16.mxu0 %v1213_v49  ;;  %672 = vmatprep.subr.bf16.mxu1 %v1288_v6 }
  0x3b   :  { %716 = vmatpush1.bf16.msra.mxu0 %v1215_v50  ;;  %673 = vmatpush1.bf16.msra.mxu1 %v1290_v8 }
  0x3c   :  { %717 = vmatprep.subr.bf16.mxu0 %v1219_v53  ;;  %674 = vmatprep.subr.bf16.mxu1 %v1294_v10 }
  0x3f   :  { %718 = vmatpush1.bf16.msra.mxu0 %v1221_v54 }
  0x40   :  { %728 = vmatprep.subr.bf16.mxu0 %v1227_v58 }
  0x42   :  { %720 = vmatmul.mubr.bf16.vlgmr.msra.gmra.mrb[0].mxu0 %v37_v59 }
  0x43   :  { %729 = vmatpush1.bf16.msra.mxu0 %v1225_v62  ;;  %760 = vmatprep.mubr.bf16.mxu0 %v40_v7 }
  0x44   :  { %730 = vmatprep.subr.bf16.mxu0 %v1233_v1 }
  0x47   :  { %731 = vmatpush1.bf16.msra.mxu0 %v1231_v4 }
  0x48   :  { %732 = vmatprep.subr.bf16.mxu0 %v1239_v5 }
  0x4b   :  { %733 = vmatpush1.bf16.msra.mxu0 %v1237_v9 }
  0x4c   :  { %734 = vmatprep.subr.bf16.mxu0 %v1245_v11 }
  0x4d   :  { %12 = vsyncpa [#allocation3], 0  ;;  %675 = vmatpush1.bf16.msra.mxu1 %v1296_v12  ;;  %v1302_v16 = vld [vmem:[%s1806_s1 + $0xf0] ss:$8 sps:$4 sm:$0xff]   ;;  %v28_v17 = vld [vmem:[%s1805_s0] sm:$0xff]  ;;  %v1358_v25 = vmov 0   ;;  %v142_v63 = vlaneseq }
  0x4e   :  { %v1249_v18 = vld [vmem:[%s1806_s1 + $0x240] ss:$8 sps:$4 sm:$0xff]   ;;  %676 = vmatprep.subr.bf16.mxu1 %v1300_v14  ;;  %v1311_v19 = vld [vmem:[%s1806_s1 + $0x304] ss:$8 sps:$4 sm:$0xff]   ;;  %v1257_v20 = vld [vmem:[%s1806_s1 + $0x254] ss:$8 sps:$4 sm:$0xff]   ;;  %v35_v21 = vpack.c.bf16 %v28_v17, %v28_v17 }
  0x4f   :  { %735 = vmatpush1.bf16.msra.mxu0 %v1243_v13  ;;  %v1309_v22 = vld [vmem:[%s1806_s1 + $0x300] ss:$8 sps:$4 sm:$0xff]   ;;  %v1255_v23 = vld [vmem:[%s1806_s1 + $0x250] ss:$8 sps:$4 sm:$0xff]   ;;  %v1263_v24 = vld [vmem:[%s1806_s1 + $0x264] ss:$8 sps:$4 sm:$0xff]  }
  0x50   :  { %736 = vmatprep.subr.bf16.mxu0 %v1251_v15  ;;  %v34_v26 = vld [vmem:[%s1805_s0 + $0x30] sm:$0xff]  ;;  %v1261_v27 = vld [vmem:[%s1806_s1 + $0x260] ss:$8 sps:$4 sm:$0xff]   ;;  %vm642_vm0 = vcmask 130048   ;;  %v1275_v31 = vld [vmem:[%s1806_s1 + $0x284] ss:$8 sps:$4 sm:$0xff]  }
  0x51   :  { %677 = vmatpush1.bf16.msra.mxu1 %v1302_v16  ;;  %v1269_v28 = vld [vmem:[%s1806_s1 + $0x274] ss:$8 sps:$4 sm:$0xff]   ;;  %v41_v29 = vpack.c.bf16 %v34_v26, %v34_v26  ;;  %v1267_v30 = vld [vmem:[%s1806_s1 + $0x270] ss:$8 sps:$4 sm:$0xff]   ;;  %v1273_v32 = vld [vmem:[%s1806_s1 + $0x280] ss:$8 sps:$4 sm:$0xff]  }
  0x52   :  { %769 = vmatprep.subr.bf16.mxu1 %v1311_v19  ;;  %v1281_v33 = vld [vmem:[%s1806_s1 + $0x294] ss:$8 sps:$4 sm:$0xff]   ;;  %v1279_v34 = vld [vmem:[%s1806_s1 + $0x290] ss:$8 sps:$4 sm:$0xff]   ;;  %v1287_v35 = vld [vmem:[%s1806_s1 + $0x2a4] ss:$8 sps:$4 sm:$0xff]  }
  0x53   :  { %737 = vmatpush1.bf16.msra.mxu0 %v1249_v18  ;;  %v1285_v36 = vld [vmem:[%s1806_s1 + $0x2a0] ss:$8 sps:$4 sm:$0xff]   ;;  %v1293_v37 = vld [vmem:[%s1806_s1 + $0x2b4] ss:$8 sps:$4 sm:$0xff]   ;;  %v1291_v38 = vld [vmem:[%s1806_s1 + $0x2b0] ss:$8 sps:$4 sm:$0xff]  }
  0x54   :  { %738 = vmatprep.subr.bf16.mxu0 %v1257_v20  ;;  %679 = vmatmul.mubr.bf16.vlgmr.msra.gmra.mrb[0].mxu1 %v35_v21  ;;  %v1299_v39 = vld [vmem:[%s1806_s1 + $0x2c4] ss:$8 sps:$4 sm:$0xff]   ;;  %v1297_v40 = vld [vmem:[%s1806_s1 + $0x2c0] ss:$8 sps:$4 sm:$0xff]   ;;  %v1305_v41 = vld [vmem:[%s1806_s1 + $0x2d4] ss:$8 sps:$4 sm:$0xff]  }
  0x55   :  { %770 = vmatpush1.bf16.msra.mxu1 %v1309_v22  ;;  %801 = vmatprep.mubr.bf16.mxu1 %v1358_v25  ;;  %v1303_v42 = vld [vmem:[%s1806_s1 + $0x2d0] ss:$8 sps:$4 sm:$0xff]   ;;  %v1308_v43 = vld [vmem:[%s1806_s1 + $0x2e4] ss:$8 sps:$4 sm:$0xff]   ;;  %v1306_v44 = vld [vmem:[%s1806_s1 + $0x2e0] ss:$8 sps:$4 sm:$0xff]  }
  0x56   :  { %981 = vmatprep.subr.bf16.mxu1 %v1358_v25  ;;  %v1314_v45 = vld [vmem:[%s1806_s1 + $0x2f4] ss:$8 sps:$4 sm:$0xff]   ;;  %v1312_v46 = vld [vmem:[%s1806_s1 + $0x2f0] ss:$8 sps:$4 sm:$0xff]   ;;  %v32_v47 = vld [vmem:[%s1805_s0 + $0x20] sm:$0xff]  ;;  %v143_v0 = vshrl.u32 %v142_v63, 7 }
  0x57   :  { %739 = vmatpush1.bf16.msra.mxu0 %v1255_v23  ;;  %v39_v48 = vpack.c.bf16 %v32_v47, %v32_v47  ;;  %v1315_v49 = vld [vmem:[%s1810_s5] sm:$0xff]   ;;  %v1316_v50 = vld [vmem:[%s1810_s5 + $0x8] sm:$0xff]   ;;  %v1317_v51 = vld [vmem:[%s1810_s5 + $0x10] sm:$0xff]   ;;  %vm816_vm3 = vcmask 588800   ;;  %vm977_vm4 = vcmask 1043456   ;;  %s1359_s8 = smov [#allocation2]  }
  0x58   :  { %740 = vmatprep.subr.bf16.mxu0 %v1263_v24  ;;  %v1318_v52 = vld [vmem:[%s1810_s5 + $0x18] sm:$0xff]   ;;  %v1319_v53 = vld [vmem:[%s1810_s5 + $0x20] sm:$0xff]   ;;  %v1320_v54 = vld [vmem:[%s1810_s5 + $0x28] sm:$0xff]   ;;  %v1741_v1 = vsub.s32 0, %v143_v0  ;;  %v1746_v3 = vsub.s32 1, %v143_v0  ;;  %s1034_s0 = sshll.u32 %s1359_s8, 4  ;;  %s1035_s0 = int_to_ptr.vmem [resolvable:$true] %s1034_s0 }
  0x59   :  { %v140_v2 = vld [vmem:[%s1807_s2] sm:$0x3]  ;;  %vm1026_vm5 = vcmask 80896   ;;  %s1334_s9 = scalar_lea.vmem %s1035_s0, 128  ;;  %p1339_p1 = scmp.lt.s32.totalorder %s1035_s0, %s1035_s0 }
  0x5a   :  { %v145_v4 = vrot.slane %v140_v2, %v1741_v1  ;;  %v149_v5 = vrot.slane %v140_v2, %v1746_v3  ;;  %p1335_p0 = scmp.ne.s32.totalorder %s1035_s0, %s1334_s9  ;;  %p1340_p2 = scmp.lt.s32.totalorder %s1334_s9, %s1334_s9 }
  0x5b   :  { %741 = vmatpush1.bf16.msra.mxu0 %v1261_v27  ;;  %v1321_v27 = vld [vmem:[%s1810_s5 + $0x30] sm:$0xff]  }
  0x5c   :  { %742 = vmatprep.subr.bf16.mxu0 %v1269_v28  ;;  %1140 = vmatmul.mubr.msk.bf16.vlgmr.msra.gmra.mrb[4].mxu1 %vm642_vm0, %v41_v29  ;;  %v1322_v28 = vld [vmem:[%s1810_s5 + $0x38] sm:$0xff]   ;;  %v1323_v29 = vld [vmem:[%s1810_s5 + $0x40] sm:$0xff]   ;;  %p1341_p3 = por %p1340_p2, %p1339_p1 }
  0x5d   :  { %982 = vmatpush1.bf16.msra.mxu1 %v1315_v49 }
  0x5e   :  { %983 = vmatprep.subr.bf16.mxu1 %v1358_v25  ;;  %p1342_p4 = pnand %p1341_p3, %p1335_p0 }
  0x5f   :  { %743 = vmatpush1.bf16.msra.mxu0 %v1267_v30  ;;  %v1324_v30 = vld [vmem:[%s1810_s5 + $0x48] sm:$0xff]  }
  0x60   :  { %744 = vmatprep.subr.bf16.mxu0 %v1275_v31  ;;  %v1325_v31 = vld [vmem:[%s1810_s5 + $0x50] sm:$0xff]  }
  0x61   :  { %984 = vmatpush1.bf16.msra.mxu1 %v1316_v50 }
  0x62   :  { %985 = vmatprep.subr.bf16.mxu1 %v1358_v25 }
  0x63   :  { %745 = vmatpush1.bf16.msra.mxu0 %v1273_v32  ;;  %v1326_v32 = vld [vmem:[%s1810_s5 + $0x58] sm:$0xff]  }
  0x64   :  { %746 = vmatprep.subr.bf16.mxu0 %v1281_v33  ;;  %v1327_v33 = vld [vmem:[%s1810_s5 + $0x60] ss:$0 sps:$4 sm:$0xff]  }
  0x65   :  { %986 = vmatpush1.bf16.msra.mxu1 %v1317_v51 }
  0x66   :  { %987 = vmatprep.subr.bf16.mxu1 %v1358_v25 }
  0x67   :  { %747 = vmatpush1.bf16.msra.mxu0 %v1279_v34  ;;  %v979_v34 = vsel %vm977_vm4, %v1327_v33, 0 }
  0x68   :  { %748 = vmatprep.subr.bf16.mxu0 %v1287_v35 }
  0x69   :  { %988 = vmatpush1.bf16.msra.mxu1 %v1318_v52 }
  0x6a   :  { %989 = vmatprep.subr.bf16.mxu1 %v1358_v25 }
  0x6b   :  { %749 = vmatpush1.bf16.msra.mxu0 %v1285_v36 }
  0x6c   :  { %750 = vmatprep.subr.bf16.mxu0 %v1293_v37 }
  0x6d   :  { %990 = vmatpush1.bf16.msra.mxu1 %v1319_v53 }
  0x6e   :  { %991 = vmatprep.subr.bf16.mxu1 %v1358_v25 }
  0x6f   :  { %751 = vmatpush1.bf16.msra.mxu0 %v1291_v38 }
  0x70   :  { %752 = vmatprep.subr.bf16.mxu0 %v1299_v39 }
  0x71   :  { %992 = vmatpush1.bf16.msra.mxu1 %v1320_v54 }
  0x72   :  { %993 = vmatprep.subr.bf16.mxu1 %v1358_v25 }
  0x73   :  { %753 = vmatpush1.bf16.msra.mxu0 %v1297_v40 }
  0x74   :  { %754 = vmatprep.subr.bf16.mxu0 %v1305_v41 }
  0x75   :  { %994 = vmatpush1.bf16.msra.mxu1 %v1321_v27 }
  0x76   :  { %995 = vmatprep.subr.bf16.mxu1 %v1358_v25 }
  0x77   :  { %755 = vmatpush1.bf16.msra.mxu0 %v1303_v42  ;;  %v837_v42 = vld [vmem:[%s1808_s3] sm:$0x3] }
  0x78   :  { %756 = vmatprep.subr.bf16.mxu0 %v1308_v43  ;;  %v851_v43 = vld [vmem:[%s1809_s4] sm:$0x3] }
  0x79   :  { %996 = vmatpush1.bf16.msra.mxu1 %v1322_v28  ;;  %v860_v49 = vrot.slane %v851_v43, %v1746_v3  ;;  %v856_v51 = vrot.slane %v851_v43, %v1741_v1 }
  0x7a   :  { %997 = vmatprep.subr.bf16.mxu1 %v1358_v25 }
  0x7b   :  { %757 = vmatpush1.bf16.msra.mxu0 %v1306_v44  ;;  %v846_v44 = vrot.slane %v837_v42, %v1746_v3 }
  0x7c   :  { %758 = vmatprep.subr.bf16.mxu0 %v1314_v45 }
  0x7d   :  { %998 = vmatpush1.bf16.msra.mxu1 %v1323_v29 }
  0x7e   :  { %999 = vmatprep.subr.bf16.mxu1 %v1358_v25 }
  0x7f   :  { %759 = vmatpush1.bf16.msra.mxu0 %v1312_v46 }
  0x81   :  { %1000 = vmatpush1.bf16.msra.mxu1 %v1324_v30 }
  0x82   :  { %761 = vmatmul.mubr.bf16.vlgmr.msra.gmra.mrb[0].mxu0 %v39_v48  ;;  %1001 = vmatprep.subr.bf16.mxu1 %v1358_v25 }
  0x85   :  { %1002 = vmatpush1.bf16.msra.mxu1 %v1325_v31 }
  0x86   :  { %1003 = vmatprep.subr.bf16.mxu1 %v1358_v25 }
  0x89   :  { %1004 = vmatpush1.bf16.msra.mxu1 %v1326_v32 }
  0x8a   :  { %1005 = vmatprep.subr.bf16.mxu1 %v1358_v25  ;;  %v842_v25 = vrot.slane %v837_v42, %v1741_v1 }
  0x8d   :  { %1006 = vmatpush1.bf16.msra.mxu1 %v979_v34 }
 0x127   :  { %v680_v55 = vpop.f32.mrb[0].mxu1 }
 0x128   :  { %v682_v56 = vpop.f32.mrb[1].mxu1  ;;  %v681_v6 = vadd.f32 %v680_v55, %v145_v4 }
 0x129   :  { %v684_v57 = vpop.f32.mrb[2].mxu1  ;;  %v683_v7 = vadd.f32 %v682_v56, %v149_v5 }
 0x12a   :  { %v685_v58 = vpop.f32.mrb[3].mxu1 }
 0x12b   :  { %v1141_v58 = vld [vmem:[%s1811_s6] ss:$0 sm:$0xff] }
 0x12f   :  { %v803_v59 = vpop.f32.mrb[4].mxu1 }
 0x130   :  { %v805_v60 = vpop.f32.mrb[5].mxu1 }
 0x131   :  { %v807_v61 = vpop.f32.mrb[6].mxu1 }
 0x132   :  { %v808_v62 = vpop.f32.mrb[7].mxu1 }
 0x155   :  { %v762_v8 = vpop.f32.mrb[0].mxu0 }
 0x156   :  { %v1157_v9 = vadd.f32 %v762_v8, %v681_v6  ;;  %v764_v10 = vpop.f32.mrb[1].mxu0 }
 0x157   :  { %v1160_v11 = vadd.f32 %v764_v10, %v683_v7  ;;  %v766_v12 = vpop.f32.mrb[2].mxu0 }
 0x158   :  { %v1158_v13 = vadd.f32 %v1157_v9, %v803_v59  ;;  %v767_v14 = vpop.f32.mrb[3].mxu0 }
 0x159   :  { %v1161_v15 = vadd.f32 %v1160_v11, %v805_v60 }
 0x15a   :  { %v812_v16 = vmul.f32 0.02, %v1158_v13  ;;  %vm810_vm1 = vcmp.gt.f32.partialorder %v1158_v13, 0.0 }
 0x15b   :  { %v813_v17 = vmul.f32 0.02, %v1161_v15  ;;  %vm811_vm2 = vcmp.gt.f32.partialorder %v1161_v15, 0.0 }
 0x15c   :  { %v814_v19 = vsel %vm810_vm1, %v1158_v13, %v812_v16 }
 0x15d   :  { %v815_v18 = vsel %vm811_vm2, %v1161_v15, %v813_v17  ;;  %v821_v24 = vmul.f32 %v814_v19, %v814_v19 }
 0x15e   :  { %v817_v20 = vsel %vm816_vm3, %v815_v18, 0.0  ;;  %v822_v21 = vmul.f32 %v815_v18, %v815_v18 }
 0x15f   :  { %v818_v22 = vadd.f32 %v817_v20, %v814_v19 }
 0x160   :  { %v823_v23 = vsel %vm816_vm3, %v822_v21, 0.0 }
 0x161   :  { %819 = vadd.xlane.f32.xlu0 %v818_v22  ;;  %v824_v26 = vadd.f32 %v823_v23, %v821_v24 }
 0x165   :  { %825 = vadd.xlane.f32.xlu0 %v824_v26 }
 0x1ee   :  { %v820_v35 = vpop.xlane.xlu0 %819 }
 0x1ef   :  { %v827_v36 = vmul.f32 0.005, %v820_v35 }
 0x1f1   :  { %v829_v38 = vmul.f32 %v827_v36, %v827_v36  ;;  %v831_v45 = vsub.f32 %v814_v19, %v827_v36  ;;  %v832_v46 = vsub.f32 %v815_v18, %v827_v36 }
 0x1f2   :  { %v826_v37 = vpop.xlane.xlu0 %825 }
 0x1f3   :  { %v828_v39 = vmul.f32 0.005, %v826_v37 }
 0x1f5   :  { %v830_v40 = vsub.f32 %v828_v39, %v829_v38 }
 0x1f7   :  { %v833_v41 = vadd.f32 1e-05, %v830_v40 }
 0x1f9   :  { %1328 = vrsqrt.f32 %v833_v41 }
 0x203   :  { %v1329_v47 = vpop.eup %1328 }
 0x204   :  { %v836_v48 = vmul.f32 %v1329_v47, %v832_v46  ;;  %v835_v50 = vmul.f32 %v1329_v47, %v831_v45 }
 0x206   :  { %v850_v52 = vmul.f32 %v846_v44, %v836_v48  ;;  %v849_v53 = vmul.f32 %v842_v25, %v835_v50 }
 0x208   :  { %v864_v54 = vadd.f32 %v860_v49, %v850_v52  ;;  %v863_v55 = vadd.f32 %v856_v51, %v849_v53 }
 0x20a   :  { %v866_v56 = vpack.c.bf16 %v864_v54, %v864_v54  ;;  %v865_v57 = vpack.c.bf16 %v863_v55, %v863_v55 }
 0x20c   :  { %1155 = vmatprep.mubr.msk.bf16.mxu1 %vm816_vm3, %v866_v56 }
 0x20d   :  { %1014 = vmatmul.mubr.bf16.vlgmr.msra.gmra.mrb[8].mxu1 %v865_v57 }
 0x2e0   :  { %v1015_v59 = vpop.f32.mrb[8].mxu1 }
 0x2e1   :  { %v1016_v60 = vadd.f32 %v1141_v58, %v1015_v59  ;;  %v1017_v61 = vpop.f32.mrb[9].mxu1 }
 0x2e2   :  { %v1018_v62 = vpop.f32.mrb[10].mxu1 }
 0x2e3   :  { %v1021_v63 = vsub.f32 0.0, %v1016_v60  ;;  %v1019_v0 = vpop.f32.mrb[11].mxu1 }
 0x2e5   :  { %v1022_v1 = vmul.f32 1.442695, %v1021_v63 }
 0x2e7   :  { %1330 = vpow2.f32 %v1022_v1 }
 0x2f1   :  { %v1331_v2 = vpop.eup %1330 }
 0x2f2   :  { %v1024_v3 = vadd.f32 1.0, %v1331_v2 }
 0x2f4   :  { %1332 = vrcp.f32 %v1024_v3 }
 0x2fe   :  { %v1333_v4 = vpop.eup %1332 }
 0x2ff   :  { %1027 = vst.msk [vmem:[#allocation2] sm:$0xff] %vm1026_vm5, %v1333_v4 }
 0x300   :  { %1345 = shalt.err (!%p1342_p4)
}
 0x301   :  { %s1346_s11 = scalar_lea.hbm %s1812_s7, 128 }
 0x302   :  { %p1347_p5 = scmp.ne.s32.totalorder %s1812_s7, %s1346_s11  ;;  %p1350_p6 = scmp.lt.u32.totalorder %s1346_s11, %s1812_s7 }
 0x304   :  { %p1352_p7 = pnand %p1350_p6, %p1347_p5 }
 0x306   :  { %1355 = shalt.err (!%p1352_p7)
}
 0x307   :  { %1037 = dma.vmem_to_hbm [thread:$0]  %s1035_s0, 128, %s1812_s7, [#allocation3]  }
 0x308   :  { %1356 = dma.done.wait [#allocation3], 128  }
 0x309   :  { %1357 = vsyncadd [#allocation3], 4294967168 }
 0x30a   :  { %1041 = vsyncpa [#allocation3], 1 }

</bundles_post_ra>
